<compile_context>
chip_gen: v7x
topology: tpu7x:2x2x1
jax: 0.10.0
libtpu: 0.0.40
codegen_flags: <defaults>
</compile_context>

<pallas_src>
import functools

import jax
import jax.numpy as jnp
from jax import lax
from jax.experimental import pallas as pl
from jax.experimental.pallas import tpu as pltpu


# ------------------------------ hardware query ------------------------------ #

_VMEM_PHYS = None


def _physical_vmem_bytes():
    global _VMEM_PHYS
    if _VMEM_PHYS is None:
        try:
            info = pltpu.get_tpu_info()
            cap = getattr(info, "vmem_capacity_bytes", None)
            _VMEM_PHYS = int(cap) if cap else 64 * 1024 * 1024
        except Exception:
            _VMEM_PHYS = 64 * 1024 * 1024   # conservative (v7x-sized)
    return _VMEM_PHYS


def _vmem_cap_bytes():
    # ~75% of physical: ~96 MiB on v5e/v6e (128 MiB), ~48 MiB on v7x (64 MiB).
    return int(0.75 * _physical_vmem_bytes())


def _vmem_limit(est_bytes):
    cap = _vmem_cap_bytes()
    return int(min(cap, max(32 * 1024 * 1024, 4 * int(est_bytes))))


# ------------------------------ tiling helpers ------------------------------ #

def _pick_tile(dim, target, align):
    """Largest tile <= target that evenly divides `dim` and is `align`-aligned,
    or the full dim if dim <= target (or no aligned divisor exists; full-dim
    blocks are always layout-legal)."""
    if dim <= target:
        return dim
    t = (target // align) * align
    while t >= align:
        if dim % t == 0:
            return t
        t -= align
    return dim


def _linear_tiles(M, N, K, itemsize, cap_bytes):
    sub = 16 if itemsize <= 2 else 8          # bf16 packs 16 rows / sublane group
    big = cap_bytes >= 96 * 1024 * 1024
    tn = N if N <= 2048 else _pick_tile(N, 512, 128)
    tm = _pick_tile(M, 1024 if big else 512, sub)
    tk = _pick_tile(K, 1024, 128)

    def est(a, b, c):
        # double-buffered x & w tiles + double-buffered out + f32 acc scratch
        return 2 * (a * c + b * c) * itemsize + 2 * a * b * 4 + a * b * 4

    budget = int(0.8 * cap_bytes)
    for _ in range(24):
        if est(tm, tn, tk) <= budget:
            break
        progressed = False
        for which in ("k", "m", "n"):
            if which == "k" and tk > 128:
                nv = _pick_tile(K, max(128, tk // 2), 128)
                if nv < tk:
                    tk, progressed = nv, True
                    break
            if which == "m" and tm > sub:
                nv = _pick_tile(M, max(sub, tm // 2), sub)
                if nv < tm:
                    tm, progressed = nv, True
                    break
            if which == "n" and tn > 128:
                nv = _pick_tile(N, max(128, tn // 2), 128)
                if nv < tn:
                    tn, progressed = nv, True
                    break
        if not progressed:
            break
    return tm, tn, tk


def _attn_tiles(n, m, hd, heads, itemsize, cap_bytes):
    sub = 16 if itemsize <= 2 else 8
    big = cap_bytes >= 96 * 1024 * 1024
    tq = _pick_tile(n, 512 if big else 256, sub)
    tkv = _pick_tile(m, 1024 if big else 512, sub)

    def est(a, c):
        return (2 * (a * hd + c * 2 * hd) * itemsize     # double-buffered q, kv
                + 2 * a * hd * itemsize                  # double-buffered out
                + a * hd * 4 + 2 * a * max(heads, 128) * 4   # f32 scratch
                + 2 * a * c * 4)                         # transient scores / exp

    budget = int(0.8 * cap_bytes)
    for _ in range(24):
        if est(tq, tkv) <= budget:
            break
        progressed = False
        if tkv > sub and tkv >= tq:
            nv = _pick_tile(m, max(sub, tkv // 2), sub)
            if nv < tkv:
                tkv, progressed = nv, True
        if not progressed and tq > sub:
            nv = _pick_tile(n, max(sub, tq // 2), sub)
            if nv < tq:
                tq, progressed = nv, True
        if not progressed:
            break
    return tq, tkv


# ----------------------------- Pallas kernels ------------------------------ #

def _linear_kernel(x_ref, w_ref, o_ref, acc_ref):
    # x block: (tm, tk); w block: (tn, tk) (torch (out, in) layout).
    @pl.when(pl.program_id(2) == 0)
    def _():
        acc_ref[...] = jnp.zeros_like(acc_ref)

    acc_ref[...] += lax.dot_general(
        x_ref[...], w_ref[...], (((1,), (1,)), ((), ())),
        preferred_element_type=jnp.float32)

    @pl.when(pl.program_id(2) == pl.num_programs(2) - 1)
    def _():
        o_ref[...] = acc_ref[...].astype(o_ref.dtype)


def _linear_bias_kernel(x_ref, w_ref, b_ref, o_ref, acc_ref):
    @pl.when(pl.program_id(2) == 0)
    def _():
        acc_ref[...] = jnp.zeros_like(acc_ref)

    acc_ref[...] += lax.dot_general(
        x_ref[...], w_ref[...], (((1,), (1,)), ((), ())),
        preferred_element_type=jnp.float32)

    @pl.when(pl.program_id(2) == pl.num_programs(2) - 1)
    def _():
        o_ref[...] = (acc_ref[...] + b_ref[...].astype(jnp.float32)).astype(o_ref.dtype)


def _flash_attn_kernel(q_ref, kv_ref, o_ref, m_sc, l_sc, acc_sc, *,
                       heads, dim_head):
    # q_ref: (tq, H*D); kv_ref: (tkv, 2*H*D); o_ref: (tq, H*D).
    # Grid: (batch [parallel], q-tiles [parallel], kv-tiles [arbitrary]).
    # Softmax scale is pre-folded into the q projection weights.
    kvi = pl.program_id(2)
    hd = heads * dim_head

    @pl.when(kvi == 0)
    def _():
        m_sc[...] = jnp.full_like(m_sc, -jnp.inf)
        l_sc[...] = jnp.zeros_like(l_sc)
        acc_sc[...] = jnp.zeros_like(acc_sc)

    q = q_ref[...]
    kv = kv_ref[...]

    for h in range(heads):                       # static, fully unrolled
        lo = h * dim_head
        qh = q[:, lo:lo + dim_head]              # (tq, d)
        kh = kv[:, lo:lo + dim_head]             # (tkv, d)
        vh = kv[:, hd + lo:hd + lo + dim_head]   # (tkv, d)

        # q @ k^T without materializing a transpose: contract last dims (MXU).
        s = lax.dot_general(qh, kh, (((1,), (1,)), ((), ())),
                            preferred_element_type=jnp.float32)   # (tq, tkv)

        m_prev = m_sc[:, h:h + 1]                # (tq, 1) f32
        l_prev = l_sc[:, h:h + 1]
        m_new = jnp.maximum(m_prev, jnp.max(s, axis=-1, keepdims=True))
        alpha = jnp.exp(m_prev - m_new)          # online-softmax rescale
        p = jnp.exp(s - m_new)                   # EUP

        l_sc[:, h:h + 1] = alpha * l_prev + jnp.sum(p, axis=-1, keepdims=True)
        # Direct per-head store into the accumulator slice (no outs list).
        acc_sc[:, lo:lo + dim_head] = (
            alpha * acc_sc[:, lo:lo + dim_head]
            + jnp.dot(p.astype(vh.dtype), vh, preferred_element_type=jnp.float32))
        m_sc[:, h:h + 1] = m_new

    @pl.when(kvi == pl.num_programs(2) - 1)
    def _():
        for h in range(heads):
            lo = h * dim_head
            inv = pl.reciprocal(l_sc[:, h:h + 1], approx=True)   # EUP slot
            o_ref[:, lo:lo + dim_head] = (
                acc_sc[:, lo:lo + dim_head] * inv).astype(o_ref.dtype)


# ------------------------------ Pallas wrappers ----------------------------- #

def pallas_linear(x2d, weight, bias=None, mxu_dtype=jnp.bfloat16, out_dtype=None):
    """y = x2d @ weight.T (+ bias).  `weight` stays in torch (out, in) layout."""
    M, K = x2d.shape
    N = weight.shape[0]
    out_dtype = x2d.dtype if out_dtype is None else out_dtype
    if mxu_dtype is not None:
        x2d = x2d.astype(mxu_dtype)
        weight = weight.astype(mxu_dtype)
    in_itemsize = x2d.dtype.itemsize
    out_itemsize = jnp.dtype(out_dtype).itemsize
    cap = _vmem_cap_bytes()

    tm, tn, tk = _linear_tiles(M, N, K, in_itemsize, cap)
    grid = (M // tm, N // tn, K // tk)

    est_vmem = (2 * (tm * tk + tn * tk) * in_itemsize
                + 2 * tm * tn * out_itemsize
                + tm * tn * 4)
    cost = pl.CostEstimate(
        flops=2 * M * N * K,
        transcendentals=0,
        bytes_accessed=int((M * K + K * N) * in_itemsize + M * N * out_itemsize),
    )
    cparams = pltpu.CompilerParams(
        dimension_semantics=("parallel", "parallel", "arbitrary"),
        vmem_limit_bytes=_vmem_limit(est_vmem),
    )

    if bias is None:
        return pl.pallas_call(
            _linear_kernel,
            out_shape=jax.ShapeDtypeStruct((M, N), out_dtype),
            grid=grid,
            in_specs=[
                pl.BlockSpec((tm, tk), lambda i, j, k: (i, k)),
                pl.BlockSpec((tn, tk), lambda i, j, k: (j, k)),
            ],
            out_specs=pl.BlockSpec((tm, tn), lambda i, j, k: (i, j)),
            scratch_shapes=[pltpu.VMEM((tm, tn), jnp.float32)],
            compiler_params=cparams,
            cost_estimate=cost,
        )(x2d, weight)

    b2d = bias.reshape(1, N).astype(jnp.float32)
    return pl.pallas_call(
        _linear_bias_kernel,
        out_shape=jax.ShapeDtypeStruct((M, N), out_dtype),
        grid=grid,
        in_specs=[
            pl.BlockSpec((tm, tk), lambda i, j, k: (i, k)),
            pl.BlockSpec((tn, tk), lambda i, j, k: (j, k)),
            pl.BlockSpec((1, tn), lambda i, j, k: (0, j)),
        ],
        out_specs=pl.BlockSpec((tm, tn), lambda i, j, k: (i, j)),
        scratch_shapes=[pltpu.VMEM((tm, tn), jnp.float32)],
        compiler_params=cparams,
        cost_estimate=cost,
    )(x2d, weight, b2d)


def pallas_mha(q, kv, heads, dim_head, mxu_dtype=jnp.bfloat16):
    """q: (b, n, H*D), kv: (b, m, 2*H*D) -> (b, n, H*D).  Flash-tiled over
    (batch, q-tiles, kv-tiles); scale must already be folded into q."""
    b, n, hd = q.shape
    m = kv.shape[1]
    assert hd == heads * dim_head and kv.shape[2] == 2 * hd
    if mxu_dtype is not None:
        q = q.astype(mxu_dtype)
        kv = kv.astype(mxu_dtype)
    out_dtype = q.dtype
    itemsize = q.dtype.itemsize
    cap = _vmem_cap_bytes()

    tq, tkv = _attn_tiles(n, m, hd, heads, itemsize, cap)
    grid = (b, n // tq, m // tkv)

    est_vmem = (2 * (tq * hd + tkv * 2 * hd) * itemsize
                + 2 * tq * hd * itemsize
                + tq * hd * 4 + 2 * tq * max(heads, 128) * 4
                + 2 * tq * tkv * 4)
    cost = pl.CostEstimate(
        flops=4 * b * heads * n * m * dim_head,
        transcendentals=b * heads * n * m,
        bytes_accessed=int((b * n * hd + b * (n // tq) * m * 2 * hd) * itemsize
                           + b * n * hd * jnp.dtype(out_dtype).itemsize),
    )

    kernel = functools.partial(_flash_attn_kernel, heads=heads, dim_head=dim_head)

    return pl.pallas_call(
        kernel,
        out_shape=jax.ShapeDtypeStruct((b, n, hd), out_dtype),
        grid=grid,
        in_specs=[
            pl.BlockSpec((None, tq, hd), lambda bi, qi, ki: (bi, qi, 0)),
            pl.BlockSpec((None, tkv, 2 * hd), lambda bi, qi, ki: (bi, ki, 0)),
        ],
        out_specs=pl.BlockSpec((None, tq, hd), lambda bi, qi, ki: (bi, qi, 0)),
        scratch_shapes=[
            pltpu.VMEM((tq, heads), jnp.float32),   # m_i (running max, per head)
            pltpu.VMEM((tq, heads), jnp.float32),   # l_i (running sum, per head)
            pltpu.VMEM((tq, hd), jnp.float32),      # acc
        ],
        compiler_params=pltpu.CompilerParams(
            dimension_semantics=("parallel", "parallel", "arbitrary"),
            vmem_limit_bytes=_vmem_limit(est_vmem),
        ),
        cost_estimate=cost,
    )(q, kv)


# ----------------------------- Module equivalent ---------------------------- #

def init_attention_params(key, dim, heads=8, dim_head=64):
    inner_dim = heads * dim_head
    k1, k2, k3 = jax.random.split(key, 3)
    return {
        # torch nn.Linear weight layout: (out_features, in_features).
        # w_q and w_kv are fused: rows [0:inner] = to_q, rows [inner:] = to_kv.
        "w_qkv": 0.05 * jax.random.normal(k1, (3 * inner_dim, dim), jnp.float32),
        "w_out": 0.05 * jax.random.normal(k2, (dim, inner_dim), jnp.float32),
        "b_out": 0.05 * jax.random.normal(k3, (dim,), jnp.float32),
    }


def prepare_attention_params(params, *, heads, dim_head):
    """One-time constant fold of the softmax scale into the q projection rows."""
    inner = heads * dim_head
    scale = jnp.asarray(dim_head ** (-0.5), params["w_qkv"].dtype)
    w_qkv = jnp.concatenate(
        [params["w_qkv"][:inner] * scale, params["w_qkv"][inner:]], axis=0)
    return dict(params, w_qkv=w_qkv)


def attention_forward(params, x, context=None, kv_include_self=False, *,
                      heads, dim_head, mxu_dtype=jnp.bfloat16):
    """params must come from prepare_attention_params (scale folded into w_q)."""
    inner = heads * dim_head
    b, n, dim = x.shape

    self_attn = (context is None) and (not kv_include_self)
    ctx = x if context is None else context
    if kv_include_self:
        ctx = jnp.concatenate([x, ctx], axis=1)
    m = ctx.shape[1]

    # Projections feed the attention kernel directly in MXU dtype (bf16 path)
    # so no extra cast / extra HBM round trip between kernels.
    proj_dtype = x.dtype if mxu_dtype is None else mxu_dtype

    if self_attn:
        # Fused q/kv projection: x read once, one kernel launch, wide N.
        qkv = pallas_linear(x.reshape(b * n, dim), params["w_qkv"],
                            mxu_dtype=mxu_dtype,
                            out_dtype=proj_dtype).reshape(b, n, 3 * inner)
        q = qkv[..., :inner]          # (b, n, H*D)
        kv = qkv[..., inner:]         # (b, m, 2*H*D)
    else:
        w_q = params["w_qkv"][:inner]
        w_kv = params["w_qkv"][inner:]
        q = pallas_linear(x.reshape(b * n, dim), w_q, mxu_dtype=mxu_dtype,
                          out_dtype=proj_dtype).reshape(b, n, inner)
        kv = pallas_linear(ctx.reshape(b * m, dim), w_kv, mxu_dtype=mxu_dtype,
                           out_dtype=proj_dtype).reshape(b, m, 2 * inner)

    # Flash attention directly in (b, seq, H*D) layout -> no head-split transposes.
    out = pallas_mha(q, kv, heads, dim_head, mxu_dtype=mxu_dtype)

    # Output projection (+ bias), back to the input dtype.
    out = pallas_linear(out.reshape(b * n, inner), params["w_out"],
                        params["b_out"], mxu_dtype=mxu_dtype,
                        out_dtype=x.dtype).reshape(b, n, dim)
    return out


# -------------------------- pure-JAX reference check ------------------------ #

def attention_reference(params, x, heads, dim_head):
    inner = heads * dim_head
    b, n, dim = x.shape
    scale = dim_head ** (-0.5)
    w_q = params["w_qkv"][:inner]
    w_kv = params["w_qkv"][inner:]
    q = x @ w_q.T
    kv = x @ w_kv.T
    k, v = kv[..., :inner], kv[..., inner:]
    sh = lambda t: t.reshape(b, n, heads, dim_head).transpose(0, 2, 1, 3)
    qh, kh, vh = sh(q), sh(k), sh(v)
    dots = jnp.einsum("bhid,bhjd->bhij", qh, kh) * scale
    attn = jax.nn.softmax(dots, axis=-1)
    out = jnp.einsum("bhij,bhjd->bhid", attn, vh)
    out = out.transpose(0, 2, 1, 3).reshape(b, n, inner)
    return out @ params["w_out"].T + params["b_out"]


# ----------------------------------- main ----------------------------------- #

if __name__ == "__main__":
    key = jax.random.PRNGKey(0)
    kp, kx = jax.random.split(key)

    # small shapes consistent with the module
    B, N, DIM, HEADS, DIM_HEAD = 2, 8, 32, 2, 16

    params = init_attention_params(kp, DIM, heads=HEADS, dim_head=DIM_HEAD)
    prepped = prepare_attention_params(params, heads=HEADS, dim_head=DIM_HEAD)
    x = jax.random.normal(kx, (B, N, DIM), jnp.float32)

    ref = attention_reference(params, x, HEADS, DIM_HEAD)

    # 1) exact-math check: f32 MXU operands, tight tolerance
    #    (only the approx EUP reciprocal in the softmax denom deviates).
    fwd_f32 = jax.jit(functools.partial(
        attention_forward, heads=HEADS, dim_head=DIM_HEAD, mxu_dtype=None))
    out_f32 = jax.block_until_ready(fwd_f32(prepped, x))
    assert out_f32.shape == (B, N, DIM), out_f32.shape
    err_f32 = float(jnp.max(jnp.abs(out_f32 - ref)))
    assert jnp.allclose(out_f32, ref, atol=2e-3, rtol=2e-3), err_f32

    # 2) default fast path: bf16 MXU operands, f32 accumulation / softmax stats.
    fwd = jax.jit(functools.partial(
        attention_forward, heads=HEADS, dim_head=DIM_HEAD))
    out = jax.block_until_ready(fwd(prepped, x))
    assert out.shape == (B, N, DIM), out.shape
    err_bf16 = float(jnp.max(jnp.abs(out - ref)))
    assert jnp.allclose(out, ref, atol=3e-2, rtol=3e-2), err_bf16

    print("KERNEL_OK")
</pallas_src>

<mosaic_0001>
module attributes {stable_mosaic.version = 11 : i64} {
  func.func @_linear_kernel(%arg0: i32, %arg1: i32, %arg2: i32, %arg3: memref<16x32xf32, #tpu.memory_space<vmem>>, %arg4: memref<96x32xf32, #tpu.memory_space<vmem>>, %arg5: memref<16x96xf32, #tpu.memory_space<vmem>>, %arg6: memref<16x96xf32, #tpu.memory_space<vmem>>) attributes {dimension_semantics = [#tpu.dimension_semantics<parallel>, #tpu.dimension_semantics<parallel>, #tpu.dimension_semantics<arbitrary>], iteration_bounds = array<i64: 1, 1, 1>, scalar_prefetch = 0 : i64, scratch_operands = 1 : i64, tpu.core_type = #tpu.core_type<tc>, window_params = [{transform_indices = @transform_0, window_bounds = array<i64: 16, 32>}, {transform_indices = @transform_1, window_bounds = array<i64: 96, 32>}, {transform_indices = @transform_2, window_bounds = array<i64: 16, 96>}]} {
    %c0_i32 = arith.constant 0 : i32
    %0 = arith.cmpi eq, %arg2, %c0_i32 : i32
    %1 = arith.extui %0 : i1 to i32
    %c0_i32_0 = arith.constant 0 : i32
    %2 = arith.cmpi ne, %1, %c0_i32_0 : i32
    scf.if %2 {
      %cst_10 = arith.constant 0.000000e+00 : f32
      %12 = vector.broadcast %cst_10 : f32 to vector<16x96xf32>
      %c0_11 = arith.constant 0 : index
      %c0_12 = arith.constant 0 : index
      %13 = vector.load %arg6[%c0_11, %c0_12] : memref<16x96xf32, #tpu.memory_space<vmem>>, vector<16x96xf32>
      tpu.vector_store %arg6[%c0_11, %c0_12], %12 {strides = array<i32>} : memref<16x96xf32, #tpu.memory_space<vmem>>, vector<16x96xf32>,
    } else {
    }
    %c0 = arith.constant 0 : index
    %c0_1 = arith.constant 0 : index
    %3 = vector.load %arg6[%c0, %c0_1] : memref<16x96xf32, #tpu.memory_space<vmem>>, vector<16x96xf32>
    %c0_2 = arith.constant 0 : index
    %c0_3 = arith.constant 0 : index
    %4 = vector.load %arg3[%c0_2, %c0_3] : memref<16x32xf32, #tpu.memory_space<vmem>>, vector<16x32xf32>
    %c0_4 = arith.constant 0 : index
    %c0_5 = arith.constant 0 : index
    %5 = vector.load %arg4[%c0_4, %c0_5] : memref<96x32xf32, #tpu.memory_space<vmem>>, vector<96x32xf32>
    %cst = arith.constant dense<0.000000e+00> : vector<16x96xf32>
    %6 = tpu.matmul %4, %5, %cst {dimension_numbers = #tpu.dot_dimension_numbers<[1], [1], [0], [0], [0, 0, 1, 0], [], []>} : vector<16x32xf32>, vector<96x32xf32>, vector<16x96xf32> -> vector<16x96xf32>
    %7 = arith.addf %3, %6 : vector<16x96xf32>
    %c0_6 = arith.constant 0 : index
    %c0_7 = arith.constant 0 : index
    %8 = vector.load %arg6[%c0_6, %c0_7] : memref<16x96xf32, #tpu.memory_space<vmem>>, vector<16x96xf32>
    tpu.vector_store %arg6[%c0_6, %c0_7], %7 {strides = array<i32>} : memref<16x96xf32, #tpu.memory_space<vmem>>, vector<16x96xf32>,
    %c0_i32_8 = arith.constant 0 : i32
    %9 = arith.cmpi eq, %arg2, %c0_i32_8 : i32
    %10 = arith.extui %9 : i1 to i32
    %c0_i32_9 = arith.constant 0 : i32
    %11 = arith.cmpi ne, %10, %c0_i32_9 : i32
    scf.if %11 {
      %c0_10 = arith.constant 0 : index
      %c0_11 = arith.constant 0 : index
      %12 = vector.load %arg6[%c0_10, %c0_11] : memref<16x96xf32, #tpu.memory_space<vmem>>, vector<16x96xf32>
      %c0_12 = arith.constant 0 : index
      %c0_13 = arith.constant 0 : index
      %13 = vector.load %arg5[%c0_12, %c0_13] : memref<16x96xf32, #tpu.memory_space<vmem>>, vector<16x96xf32>
      tpu.vector_store %arg5[%c0_12, %c0_13], %12 {strides = array<i32>} : memref<16x96xf32, #tpu.memory_space<vmem>>, vector<16x96xf32>,
    } else {
    }
    return
  }
  func.func @transform_0(%arg0: i32, %arg1: i32, %arg2: i32) -> (i32, i32) {
    %c0_i32 = arith.constant 0 : i32
    return %arg0, %arg2 : i32, i32
  }
  func.func @transform_1(%arg0: i32, %arg1: i32, %arg2: i32) -> (i32, i32) {
    %c0_i32 = arith.constant 0 : i32
    return %arg1, %arg2 : i32, i32
  }
  func.func @transform_2(%arg0: i32, %arg1: i32, %arg2: i32) -> (i32, i32) {
    %c0_i32 = arith.constant 0 : i32
    return %arg0, %arg1 : i32, i32
  }
}

module attributes {stable_mosaic.version = 11 : i64} {
  func.func @_flash_attn_kernel(%arg0: i32, %arg1: i32, %arg2: i32, %arg3: memref<1x8x32xf32, #tpu.memory_space<vmem>>, %arg4: memref<1x8x64xf32, #tpu.memory_space<vmem>>, %arg5: memref<1x8x32xf32, #tpu.memory_space<vmem>>, %arg6: memref<8x2xf32, #tpu.memory_space<vmem>>, %arg7: memref<8x2xf32, #tpu.memory_space<vmem>>, %arg8: memref<8x32xf32, #tpu.memory_space<vmem>>) attributes {dimension_semantics = [#tpu.dimension_semantics<parallel>, #tpu.dimension_semantics<parallel>, #tpu.dimension_semantics<arbitrary>], iteration_bounds = array<i64: 2, 1, 1>, scalar_prefetch = 0 : i64, scratch_operands = 3 : i64, tpu.core_type = #tpu.core_type<tc>, window_params = [{transform_indices = @transform_0, window_bounds = array<i64: 1, 8, 32>}, {transform_indices = @transform_1, window_bounds = array<i64: 1, 8, 64>}, {transform_indices = @transform_2, window_bounds = array<i64: 1, 8, 32>}]} {
    %c0_i32 = arith.constant 0 : i32
    %0 = arith.cmpi eq, %arg2, %c0_i32 : i32
    %1 = arith.extui %0 : i1 to i32
    %c0_i32_0 = arith.constant 0 : i32
    %2 = arith.cmpi ne, %1, %c0_i32_0 : i32
    scf.if %2 {
      %cst_37 = arith.constant 0xFF800000 : f32
      %62 = vector.broadcast %cst_37 : f32 to vector<8x2xf32>
      %c0_38 = arith.constant 0 : index
      %c0_39 = arith.constant 0 : index
      %63 = vector.load %arg6[%c0_38, %c0_39] : memref<8x2xf32, #tpu.memory_space<vmem>>, vector<8x2xf32>
      tpu.vector_store %arg6[%c0_38, %c0_39], %62 {strides = array<i32>} : memref<8x2xf32, #tpu.memory_space<vmem>>, vector<8x2xf32>,
      %cst_40 = arith.constant 0.000000e+00 : f32
      %64 = vector.broadcast %cst_40 : f32 to vector<8x2xf32>
      %c0_41 = arith.constant 0 : index
      %c0_42 = arith.constant 0 : index
      %65 = vector.load %arg7[%c0_41, %c0_42] : memref<8x2xf32, #tpu.memory_space<vmem>>, vector<8x2xf32>
      tpu.vector_store %arg7[%c0_41, %c0_42], %64 {strides = array<i32>} : memref<8x2xf32, #tpu.memory_space<vmem>>, vector<8x2xf32>,
      %cst_43 = arith.constant 0.000000e+00 : f32
      %66 = vector.broadcast %cst_43 : f32 to vector<8x32xf32>
      %c0_44 = arith.constant 0 : index
      %c0_45 = arith.constant 0 : index
      %67 = vector.load %arg8[%c0_44, %c0_45] : memref<8x32xf32, #tpu.memory_space<vmem>>, vector<8x32xf32>
      tpu.vector_store %arg8[%c0_44, %c0_45], %66 {strides = array<i32>} : memref<8x32xf32, #tpu.memory_space<vmem>>, vector<8x32xf32>,
    } else {
    }
    %c0 = arith.constant 0 : index
    %c0_1 = arith.constant 0 : index
    %c0_2 = arith.constant 0 : index
    %3 = vector.load %arg3[%c0, %c0_1, %c0_2] : memref<1x8x32xf32, #tpu.memory_space<vmem>>, vector<1x8x32xf32>
    %4 = vector.shape_cast %3 : vector<1x8x32xf32> to vector<8x32xf32>
    %c0_3 = arith.constant 0 : index
    %c0_4 = arith.constant 0 : index
    %c0_5 = arith.constant 0 : index
    %5 = vector.load %arg4[%c0_3, %c0_4, %c0_5] : memref<1x8x64xf32, #tpu.memory_space<vmem>>, vector<1x8x64xf32>
    %6 = vector.shape_cast %5 : vector<1x8x64xf32> to vector<8x64xf32>
    %7 = vector.extract_strided_slice %4 {offsets = [0, 0], sizes = [8, 16], strides = [1, 1]} : vector<8x32xf32> to vector<8x16xf32>
    %8 = vector.extract_strided_slice %6 {offsets = [0, 0], sizes = [8, 16], strides = [1, 1]} : vector<8x64xf32> to vector<8x16xf32>
    %9 = vector.extract_strided_slice %6 {offsets = [0, 32], sizes = [8, 16], strides = [1, 1]} : vector<8x64xf32> to vector<8x16xf32>
    %cst = arith.constant dense<0.000000e+00> : vector<8x8xf32>
    %10 = tpu.matmul %7, %8, %cst {dimension_numbers = #tpu.dot_dimension_numbers<[1], [1], [0], [0], [0, 0, 1, 0], [], []>} : vector<8x16xf32>, vector<8x16xf32>, vector<8x8xf32> -> vector<8x8xf32>
    %c0_6 = arith.constant 0 : index
    %c0_7 = arith.constant 0 : index
    %11 = vector.load %arg6[%c0_6, %c0_7] : memref<8x2xf32, #tpu.memory_space<vmem>>, vector<8x1xf32>
    %c0_8 = arith.constant 0 : index
    %c0_9 = arith.constant 0 : index
    %12 = vector.load %arg7[%c0_8, %c0_9] : memref<8x2xf32, #tpu.memory_space<vmem>>, vector<8x1xf32>
    %cst_10 = arith.constant dense<0xFF800000> : vector<8xf32>
    %13 = vector.multi_reduction <maximumf>, %10, %cst_10 [1] : vector<8x8xf32> to vector<8xf32>
    %14 = vector.shape_cast %13 : vector<8xf32> to vector<8x1xf32>
    %15 = arith.maximumf %11, %14 : vector<8x1xf32>
    %16 = arith.subf %11, %15 : vector<8x1xf32>
    %17 = math.exp %16 : vector<8x1xf32>
    %18 = vector.broadcast %15 : vector<8x1xf32> to vector<8x8xf32>
    %19 = arith.subf %10, %18 : vector<8x8xf32>
    %20 = math.exp %19 : vector<8x8xf32>
    %21 = arith.mulf %17, %12 : vector<8x1xf32>
    %cst_11 = arith.constant dense<0.000000e+00> : vector<8xf32>
    %22 = vector.multi_reduction <add>, %20, %cst_11 [1] : vector<8x8xf32> to vector<8xf32>
    %23 = vector.shape_cast %22 : vector<8xf32> to vector<8x1xf32>
    %24 = arith.addf %21, %23 : vector<8x1xf32>
    %c0_12 = arith.constant 0 : index
    %c0_13 = arith.constant 0 : index
    %25 = vector.load %arg7[%c0_12, %c0_13] : memref<8x2xf32, #tpu.memory_space<vmem>>, vector<8x1xf32>
    tpu.vector_store %arg7[%c0_12, %c0_13], %24 {strides = array<i32>} : memref<8x2xf32, #tpu.memory_space<vmem>>, vector<8x1xf32>,
    %c0_14 = arith.constant 0 : index
    %c0_15 = arith.constant 0 : index
    %26 = vector.load %arg8[%c0_14, %c0_15] : memref<8x32xf32, #tpu.memory_space<vmem>>, vector<8x16xf32>
    %27 = vector.broadcast %17 : vector<8x1xf32> to vector<8x16xf32>
    %28 = arith.mulf %27, %26 : vector<8x16xf32>
    %cst_16 = arith.constant dense<0.000000e+00> : vector<8x16xf32>
    %29 = tpu.matmul %20, %9, %cst_16 {dimension_numbers = #tpu.dot_dimension_numbers<[1], [0], [0], [1], [0, 0, 1, 1], [], []>} : vector<8x8xf32>, vector<8x16xf32>, vector<8x16xf32> -> vector<8x16xf32>
    %30 = arith.addf %28, %29 : vector<8x16xf32>
    %c0_17 = arith.constant 0 : index
    %c0_18 = arith.constant 0 : index
    %31 = vector.load %arg8[%c0_17, %c0_18] : memref<8x32xf32, #tpu.memory_space<vmem>>, vector<8x16xf32>
    tpu.vector_store %arg8[%c0_17, %c0_18], %30 {strides = array<i32>} : memref<8x32xf32, #tpu.memory_space<vmem>>, vector<8x16xf32>,
    %c0_19 = arith.constant 0 : index
    %c0_20 = arith.constant 0 : index
    %32 = vector.load %arg6[%c0_19, %c0_20] : memref<8x2xf32, #tpu.memory_space<vmem>>, vector<8x1xf32>
    tpu.vector_store %arg6[%c0_19, %c0_20], %15 {strides = array<i32>} : memref<8x2xf32, #tpu.memory_space<vmem>>, vector<8x1xf32>,
    %33 = vector.extract_strided_slice %4 {offsets = [0, 16], sizes = [8, 16], strides = [1, 1]} : vector<8x32xf32> to vector<8x16xf32>
    %34 = vector.extract_strided_slice %6 {offsets = [0, 16], sizes = [8, 16], strides = [1, 1]} : vector<8x64xf32> to vector<8x16xf32>
    %35 = vector.extract_strided_slice %6 {offsets = [0, 48], sizes = [8, 16], strides = [1, 1]} : vector<8x64xf32> to vector<8x16xf32>
    %cst_21 = arith.constant dense<0.000000e+00> : vector<8x8xf32>
    %36 = tpu.matmul %33, %34, %cst_21 {dimension_numbers = #tpu.dot_dimension_numbers<[1], [1], [0], [0], [0, 0, 1, 0], [], []>} : vector<8x16xf32>, vector<8x16xf32>, vector<8x8xf32> -> vector<8x8xf32>
    %c0_22 = arith.constant 0 : index
    %c1 = arith.constant 1 : index
    %37 = vector.load %arg6[%c0_22, %c1] : memref<8x2xf32, #tpu.memory_space<vmem>>, vector<8x1xf32>
    %c0_23 = arith.constant 0 : index
    %c1_24 = arith.constant 1 : index
    %38 = vector.load %arg7[%c0_23, %c1_24] : memref<8x2xf32, #tpu.memory_space<vmem>>, vector<8x1xf32>
    %cst_25 = arith.constant dense<0xFF800000> : vector<8xf32>
    %39 = vector.multi_reduction <maximumf>, %36, %cst_25 [1] : vector<8x8xf32> to vector<8xf32>
    %40 = vector.shape_cast %39 : vector<8xf32> to vector<8x1xf32>
    %41 = arith.maximumf %37, %40 : vector<8x1xf32>
    %42 = arith.subf %37, %41 : vector<8x1xf32>
    %43 = math.exp %42 : vector<8x1xf32>
    %44 = vector.broadcast %41 : vector<8x1xf32> to vector<8x8xf32>
    %45 = arith.subf %36, %44 : vector<8x8xf32>
    %46 = math.exp %45 : vector<8x8xf32>
    %47 = arith.mulf %43, %38 : vector<8x1xf32>
    %cst_26 = arith.constant dense<0.000000e+00> : vector<8xf32>
    %48 = vector.multi_reduction <add>, %46, %cst_26 [1] : vector<8x8xf32> to vector<8xf32>
    %49 = vector.shape_cast %48 : vector<8xf32> to vector<8x1xf32>
    %50 = arith.addf %47, %49 : vector<8x1xf32>
    %c0_27 = arith.constant 0 : index
    %c1_28 = arith.constant 1 : index
    %51 = vector.load %arg7[%c0_27, %c1_28] : memref<8x2xf32, #tpu.memory_space<vmem>>, vector<8x1xf32>
    tpu.vector_store %arg7[%c0_27, %c1_28], %50 {strides = array<i32>} : memref<8x2xf32, #tpu.memory_space<vmem>>, vector<8x1xf32>,
    %c0_29 = arith.constant 0 : index
    %c16 = arith.constant 16 : index
    %52 = vector.load %arg8[%c0_29, %c16] : memref<8x32xf32, #tpu.memory_space<vmem>>, vector<8x16xf32>
    %53 = vector.broadcast %43 : vector<8x1xf32> to vector<8x16xf32>
    %54 = arith.mulf %53, %52 : vector<8x16xf32>
    %cst_30 = arith.constant dense<0.000000e+00> : vector<8x16xf32>
    %55 = tpu.matmul %46, %35, %cst_30 {dimension_numbers = #tpu.dot_dimension_numbers<[1], [0], [0], [1], [0, 0, 1, 1], [], []>} : vector<8x8xf32>, vector<8x16xf32>, vector<8x16xf32> -> vector<8x16xf32>
    %56 = arith.addf %54, %55 : vector<8x16xf32>
    %c0_31 = arith.constant 0 : index
    %c16_32 = arith.constant 16 : index
    %57 = vector.load %arg8[%c0_31, %c16_32] : memref<8x32xf32, #tpu.memory_space<vmem>>, vector<8x16xf32>
    tpu.vector_store %arg8[%c0_31, %c16_32], %56 {strides = array<i32>} : memref<8x32xf32, #tpu.memory_space<vmem>>, vector<8x16xf32>,
    %c0_33 = arith.constant 0 : index
    %c1_34 = arith.constant 1 : index
    %58 = vector.load %arg6[%c0_33, %c1_34] : memref<8x2xf32, #tpu.memory_space<vmem>>, vector<8x1xf32>
    tpu.vector_store %arg6[%c0_33, %c1_34], %41 {strides = array<i32>} : memref<8x2xf32, #tpu.memory_space<vmem>>, vector<8x1xf32>,
    %c0_i32_35 = arith.constant 0 : i32
    %59 = arith.cmpi eq, %arg2, %c0_i32_35 : i32
    %60 = arith.extui %59 : i1 to i32
    %c0_i32_36 = arith.constant 0 : i32
    %61 = arith.cmpi ne, %60, %c0_i32_36 : i32
    scf.if %61 {
      %c0_37 = arith.constant 0 : index
      %c0_38 = arith.constant 0 : index
      %62 = vector.load %arg7[%c0_37, %c0_38] : memref<8x2xf32, #tpu.memory_space<vmem>>, vector<8x1xf32>
      %63 = tpu.reciprocal %62 {approx = true} : vector<8x1xf32> -> vector<8x1xf32>
      %c0_39 = arith.constant 0 : index
      %c0_40 = arith.constant 0 : index
      %64 = vector.load %arg8[%c0_39, %c0_40] : memref<8x32xf32, #tpu.memory_space<vmem>>, vector<8x16xf32>
      %65 = vector.broadcast %63 : vector<8x1xf32> to vector<8x16xf32>
      %66 = arith.mulf %64, %65 : vector<8x16xf32>
      %c0_41 = arith.constant 0 : index
      %c0_42 = arith.constant 0 : index
      %c0_43 = arith.constant 0 : index
      %67 = vector.load %arg5[%c0_41, %c0_42, %c0_43] : memref<1x8x32xf32, #tpu.memory_space<vmem>>, vector<1x8x16xf32>
      %68 = vector.shape_cast %67 : vector<1x8x16xf32> to vector<8x16xf32>
      %69 = vector.shape_cast %66 : vector<8x16xf32> to vector<1x8x16xf32>
      tpu.vector_store %arg5[%c0_41, %c0_42, %c0_43], %69 {strides = array<i32>} : memref<1x8x32xf32, #tpu.memory_space<vmem>>, vector<1x8x16xf32>,
      %c0_44 = arith.constant 0 : index
      %c1_45 = arith.constant 1 : index
      %70 = vector.load %arg7[%c0_44, %c1_45] : memref<8x2xf32, #tpu.memory_space<vmem>>, vector<8x1xf32>
      %71 = tpu.reciprocal %70 {approx = true} : vector<8x1xf32> -> vector<8x1xf32>
      %c0_46 = arith.constant 0 : index
      %c16_47 = arith.constant 16 : index
      %72 = vector.load %arg8[%c0_46, %c16_47] : memref<8x32xf32, #tpu.memory_space<vmem>>, vector<8x16xf32>
      %73 = vector.broadcast %71 : vector<8x1xf32> to vector<8x16xf32>
      %74 = arith.mulf %72, %73 : vector<8x16xf32>
      %c0_48 = arith.constant 0 : index
      %c0_49 = arith.constant 0 : index
      %c16_50 = arith.constant 16 : index
      %75 = vector.load %arg5[%c0_48, %c0_49, %c16_50] : memref<1x8x32xf32, #tpu.memory_space<vmem>>, vector<1x8x16xf32>
      %76 = vector.shape_cast %75 : vector<1x8x16xf32> to vector<8x16xf32>
      %77 = vector.shape_cast %74 : vector<8x16xf32> to vector<1x8x16xf32>
      tpu.vector_store %arg5[%c0_48, %c0_49, %c16_50], %77 {strides = array<i32>} : memref<1x8x32xf32, #tpu.memory_space<vmem>>, vector<1x8x16xf32>,
    } else {
    }
    return
  }
  func.func @transform_0(%arg0: i32, %arg1: i32, %arg2: i32) -> (i32, i32, i32) {
    %c0_i32 = arith.constant 0 : i32
    %c0_i32_0 = arith.constant 0 : i32
    return %arg0, %arg1, %c0_i32 : i32, i32, i32
  }
  func.func @transform_1(%arg0: i32, %arg1: i32, %arg2: i32) -> (i32, i32, i32) {
    %c0_i32 = arith.constant 0 : i32
    %c0_i32_0 = arith.constant 0 : i32
    return %arg0, %arg2, %c0_i32 : i32, i32, i32
  }
  func.func @transform_2(%arg0: i32, %arg1: i32, %arg2: i32) -> (i32, i32, i32) {
    %c0_i32 = arith.constant 0 : i32
    %c0_i32_0 = arith.constant 0 : i32
    return %arg0, %arg1, %c0_i32 : i32, i32, i32
  }
}

module attributes {stable_mosaic.version = 11 : i64} {
  func.func @_linear_bias_kernel(%arg0: i32, %arg1: i32, %arg2: i32, %arg3: memref<16x32xf32, #tpu.memory_space<vmem>>, %arg4: memref<32x32xf32, #tpu.memory_space<vmem>>, %arg5: memref<1x32xf32, #tpu.memory_space<vmem>>, %arg6: memref<16x32xf32, #tpu.memory_space<vmem>>, %arg7: memref<16x32xf32, #tpu.memory_space<vmem>>) attributes {dimension_semantics = [#tpu.dimension_semantics<parallel>, #tpu.dimension_semantics<parallel>, #tpu.dimension_semantics<arbitrary>], iteration_bounds = array<i64: 1, 1, 1>, scalar_prefetch = 0 : i64, scratch_operands = 1 : i64, tpu.core_type = #tpu.core_type<tc>, window_params = [{transform_indices = @transform_0, window_bounds = array<i64: 16, 32>}, {transform_indices = @transform_1, window_bounds = array<i64: 32, 32>}, {transform_indices = @transform_2, window_bounds = array<i64: 1, 32>}, {transform_indices = @transform_3, window_bounds = array<i64: 16, 32>}]} {
    %c0_i32 = arith.constant 0 : i32
    %0 = arith.cmpi eq, %arg2, %c0_i32 : i32
    %1 = arith.extui %0 : i1 to i32
    %c0_i32_0 = arith.constant 0 : i32
    %2 = arith.cmpi ne, %1, %c0_i32_0 : i32
    scf.if %2 {
      %cst_10 = arith.constant 0.000000e+00 : f32
      %12 = vector.broadcast %cst_10 : f32 to vector<16x32xf32>
      %c0_11 = arith.constant 0 : index
      %c0_12 = arith.constant 0 : index
      %13 = vector.load %arg7[%c0_11, %c0_12] : memref<16x32xf32, #tpu.memory_space<vmem>>, vector<16x32xf32>
      tpu.vector_store %arg7[%c0_11, %c0_12], %12 {strides = array<i32>} : memref<16x32xf32, #tpu.memory_space<vmem>>, vector<16x32xf32>,
    } else {
    }
    %c0 = arith.constant 0 : index
    %c0_1 = arith.constant 0 : index
    %3 = vector.load %arg7[%c0, %c0_1] : memref<16x32xf32, #tpu.memory_space<vmem>>, vector<16x32xf32>
    %c0_2 = arith.constant 0 : index
    %c0_3 = arith.constant 0 : index
    %4 = vector.load %arg3[%c0_2, %c0_3] : memref<16x32xf32, #tpu.memory_space<vmem>>, vector<16x32xf32>
    %c0_4 = arith.constant 0 : index
    %c0_5 = arith.constant 0 : index
    %5 = vector.load %arg4[%c0_4, %c0_5] : memref<32x32xf32, #tpu.memory_space<vmem>>, vector<32x32xf32>
    %cst = arith.constant dense<0.000000e+00> : vector<16x32xf32>
    %6 = tpu.matmul %4, %5, %cst {dimension_numbers = #tpu.dot_dimension_numbers<[1], [1], [0], [0], [0, 0, 1, 0], [], []>} : vector<16x32xf32>, vector<32x32xf32>, vector<16x32xf32> -> vector<16x32xf32>
    %7 = arith.addf %3, %6 : vector<16x32xf32>
    %c0_6 = arith.constant 0 : index
    %c0_7 = arith.constant 0 : index
    %8 = vector.load %arg7[%c0_6, %c0_7] : memref<16x32xf32, #tpu.memory_space<vmem>>, vector<16x32xf32>
    tpu.vector_store %arg7[%c0_6, %c0_7], %7 {strides = array<i32>} : memref<16x32xf32, #tpu.memory_space<vmem>>, vector<16x32xf32>,
    %c0_i32_8 = arith.constant 0 : i32
    %9 = arith.cmpi eq, %arg2, %c0_i32_8 : i32
    %10 = arith.extui %9 : i1 to i32
    %c0_i32_9 = arith.constant 0 : i32
    %11 = arith.cmpi ne, %10, %c0_i32_9 : i32
    scf.if %11 {
      %c0_10 = arith.constant 0 : index
      %c0_11 = arith.constant 0 : index
      %12 = vector.load %arg7[%c0_10, %c0_11] : memref<16x32xf32, #tpu.memory_space<vmem>>, vector<16x32xf32>
      %c0_12 = arith.constant 0 : index
      %c0_13 = arith.constant 0 : index
      %13 = vector.load %arg5[%c0_12, %c0_13] : memref<1x32xf32, #tpu.memory_space<vmem>>, vector<1x32xf32>
      %14 = vector.broadcast %13 : vector<1x32xf32> to vector<16x32xf32>
      %15 = arith.addf %12, %14 : vector<16x32xf32>
      %c0_14 = arith.constant 0 : index
      %c0_15 = arith.constant 0 : index
      %16 = vector.load %arg6[%c0_14, %c0_15] : memref<16x32xf32, #tpu.memory_space<vmem>>, vector<16x32xf32>
      tpu.vector_store %arg6[%c0_14, %c0_15], %15 {strides = array<i32>} : memref<16x32xf32, #tpu.memory_space<vmem>>, vector<16x32xf32>,
    } else {
    }
    return
  }
  func.func @transform_0(%arg0: i32, %arg1: i32, %arg2: i32) -> (i32, i32) {
    %c0_i32 = arith.constant 0 : i32
    return %arg0, %arg2 : i32, i32
  }
  func.func @transform_1(%arg0: i32, %arg1: i32, %arg2: i32) -> (i32, i32) {
    %c0_i32 = arith.constant 0 : i32
    return %arg1, %arg2 : i32, i32
  }
  func.func @transform_2(%arg0: i32, %arg1: i32, %arg2: i32) -> (i32, i32) {
    %c0_i32 = arith.constant 0 : i32
    %c0_i32_0 = arith.constant 0 : i32
    return %c0_i32, %arg1 : i32, i32
  }
  func.func @transform_3(%arg0: i32, %arg1: i32, %arg2: i32) -> (i32, i32) {
    %c0_i32 = arith.constant 0 : i32
    return %arg0, %arg1 : i32, i32
  }
}

</mosaic_0001>

<bundles_post_ra>
// kernel: attention_forward.3
= control target key start
LH: loop header
LB: loop body
LE: loop exit
PB: predicated region body
PF: predicated region fallthrough
CT: control target
= control target key end

     0   :  { %vm34_vm0 = vcmask 261120   ;;  %vm15_vm1 = vcmask 785408   ;;  %v260_v3 = vmov 0.0   ;;  %s362_s1 = inlined_call_operand.vmem [shape: f32[96,32], index: 1, kind: input, shape index: {}]   ;;  %s363_s0 = inlined_call_operand.vmem [shape: f32[16,32], index: 0, kind: input, shape index: {}]   ;;  %s364_s2 = inlined_call_operand.vmem [shape: f32[16,96], index: 2, kind: output, shape index: {}]  }
   0x1   :  { %v22_v0 = vld [vmem:[%s362_s1] sm:$0xff]  ;;  %v23_v1 = vld [vmem:[%s362_s1 + $0x8] sm:$0xff]  ;;  %vm284_vm2 = vmpackc.low %vm34_vm0, %vm34_vm0  ;;  %17 = vst.msk [vmem:[#allocation2 + $0x8] sm:$0xff] %vm15_vm1, %v260_v3 }
   0x2   :  { %16 = vst.msk [vmem:[#allocation2] sm:$0xff] %vm15_vm1, %v260_v3  ;;  %v223_v4 = vpack.c.bf16 %v23_v1, %v22_v0  ;;  %v24_v5 = vld [vmem:[%s362_s1 + $0x10] sm:$0xff]  ;;  %v25_v6 = vld [vmem:[%s362_s1 + $0x18] sm:$0xff]  ;;  %v20_v8 = vld [vmem:[%s363_s0] sm:$0xff] }
   0x3   :  { %v229_v7 = vpack.c.bf16 %v25_v6, %v24_v5  ;;  %220 = vmatprep.mubr.msk.f32.mxu0 %vm34_vm0, %v20_v8  ;;  %v26_v9 = vld [vmem:[%s362_s1 + $0x20] sm:$0xff]  ;;  %v27_v10 = vld [vmem:[%s362_s1 + $0x28] sm:$0xff]  ;;  %v28_v12 = vld [vmem:[%s362_s1 + $0x30] sm:$0xff] }
   0x4   :  { %225 = vmatprep.subr.msk.bf16.mxu0 %vm284_vm2, %v223_v4  ;;  %v235_v11 = vpack.c.bf16 %v27_v10, %v26_v9  ;;  %v29_v13 = vld [vmem:[%s362_s1 + $0x38] sm:$0xff]  ;;  %v30_v15 = vld [vmem:[%s362_s1 + $0x40] sm:$0xff]  ;;  %v31_v16 = vld [vmem:[%s362_s1 + $0x48] sm:$0xff] }
   0x5   :  { %228 = vmatpush3.bf16.xpose.msk.msra.mxu0 %vm284_vm2, %v223_v4  ;;  %v241_v14 = vpack.c.bf16 %v29_v13, %v28_v12  ;;  %v247_v17 = vpack.c.bf16 %v31_v16, %v30_v15  ;;  %v32_v18 = vld [vmem:[%s362_s1 + $0x50] sm:$0xff]  ;;  %v33_v19 = vld [vmem:[%s362_s1 + $0x58] sm:$0xff]  ;;  %v21_v21 = vld [vmem:[%s363_s0 + $0x8] sm:$0xff] }
   0x6   :  { %231 = vmatprep.subr.msk.bf16.mxu0 %vm284_vm2, %v229_v7  ;;  %v253_v20 = vpack.c.bf16 %v33_v19, %v32_v18 }
   0x8   :  { %v19_v22 = vld [vmem:[#allocation2 + $0x8] sm:$0xff] }
   0x9   :  { %v18_v23 = vld [vmem:[#allocation2] sm:$0xff] }
   0xd   :  { %234 = vmatpush3.bf16.xpose.msk.msra.mxu0 %vm284_vm2, %v229_v7 }
   0xe   :  { %237 = vmatprep.subr.msk.bf16.mxu0 %vm284_vm2, %v235_v11 }
  0x15   :  { %240 = vmatpush3.bf16.xpose.msk.msra.mxu0 %vm284_vm2, %v235_v11 }
  0x16   :  { %243 = vmatprep.subr.msk.bf16.mxu0 %vm284_vm2, %v241_v14 }
  0x1d   :  { %246 = vmatpush3.bf16.xpose.msk.msra.mxu0 %vm284_vm2, %v241_v14 }
  0x1e   :  { %249 = vmatprep.subr.msk.bf16.mxu0 %vm284_vm2, %v247_v17 }
  0x25   :  { %252 = vmatpush3.bf16.xpose.msk.msra.mxu0 %vm284_vm2, %v247_v17 }
  0x26   :  { %255 = vmatprep.subr.msk.bf16.mxu0 %vm284_vm2, %v253_v20 }
  0x2d   :  { %258 = vmatpush3.bf16.xpose.msk.msra.mxu0 %vm284_vm2, %v253_v20 }
  0x34   :  { %221 = vmatmul.mubr.msk.f32.vlgmr.msra.gmra.mrb[0].mxu0 %vm34_vm0, %v21_v21 }
 0x107   :  { %v222_v24 = vpop.f32.mrb[0].mxu0 }
 0x108   :  { %v153_v25 = vadd.f32 %v222_v24, %v19_v22  ;;  %v143_v26 = vpop.f32.mrb[1].mxu0 }
 0x109   :  { %v152_v27 = vadd.f32 %v143_v26, %v18_v23 }
 0x10a   :  { %156 = vst.msk [vmem:[#allocation2 + $0x8] sm:$0xff] %vm15_vm1, %v153_v25 }
 0x10b   :  { %155 = vst.msk [vmem:[#allocation2] sm:$0xff] %vm15_vm1, %v152_v27 }
 0x111   :  { %v161_v28 = vld [vmem:[#allocation2 + $0x8] sm:$0xff] }
 0x112   :  { %163 = vst.msk [vmem:[%s364_s2 + $0x8] sm:$0xff] %vm15_vm1, %v161_v28  ;;  %v160_v29 = vld [vmem:[#allocation2] sm:$0xff] }
 0x113   :  { %162 = vst.msk [vmem:[%s364_s2] sm:$0xff] %vm15_vm1, %v160_v29 }

// kernel: attention_forward.4
= control target key start
LH: loop header
LB: loop body
LE: loop exit
PB: predicated region body
PF: predicated region fallthrough
CT: control target
= control target key end

     0   :  { %s854_s9 = smov 0   ;;  %s856_s10 = smov 0   ;;  %s928_s0 = inlined_call_operand.vmem [shape: f32[2,8,32], index: 0, kind: input, shape index: {}]   ;;  %s929_s1 = inlined_call_operand.vmem [shape: f32[2,8,64], index: 1, kind: input, shape index: {}]   ;;  %s930_s2 = inlined_call_operand.vmem [shape: f32[2,8,32], index: 2, kind: output, shape index: {}]  }
   0x1   :  { %s858_s11 = smov 0  }
   0x2 LB: > { %s31_s12 = sadd.s32 1, %s824_s10  ;;  %p716_p0 = scmp.ge.s32.totalorder %s828_s11, 1  ;;  %s828_s11 = sphi %s858_s11, %s12_s11   ;;  %s824_s10 = sphi %s856_s10, %s932_s10   ;;  %s820_s9 = sphi %s854_s9, %s931_s9  }
   0x3   : > { %p33_p1 = scmp.ge.s32.totalorder %s31_s12, 2  ;;  %p151_p2 = scmp.lt.s32.totalorder %s828_s11, 3 }
   0x5   : > { %s934_s12 = smov (%p33_p1, %s31_s12), 0  ;;  %p152_p3 = pnand %p716_p0, %p151_p2 }
   0x6   : > { %p184_p4 = scmp.lt.s32.totalorder (!%p152_p3), %s820_s9, 1  ;;  %v830_v0 = vmov (!%p152_p3), 0.0   ;;  %vm831_vm0 = vmmov (!%p152_p3), 0   ;;  %vm216_vm1 = vcmask (!%p152_p3), 130048   ;;  %vm209_vm2 = vcmask (!%p152_p3), 15360   ;;  %s834_s20 = smov (!%p152_p3), 96  }
   0x7   : > { %155 = sbr.rel (%p152_p3) target bundleno = 1372 (0x55c), region = 28  ;;  %736 = vmatprep.subr.mxu0 (!%p152_p3), %v830_v0  ;;  %738 = vmatprep.mubr.msk.f32.mxu0 (!%p152_p3), %vm831_vm0, %v830_v0  ;;  %v832_v3 = vmov (!%p152_p3), -inf   ;;  %211 = vst.msk [vmem:[#allocation3] sm:$0xff] (!%p152_p3), %vm209_vm2, %v830_v0  ;;  %vm295_vm3 = vcmask (!%p152_p3), 64512   ;;  %v833_v7 = vmov (!%p152_p3), 0   ;;  %s835_s21 = smov (!%p152_p3), 112  }
   0x8   : > { %741 = vmatprep.subr.mxu1 (!%p152_p3), %v830_v0  ;;  %743 = vmatprep.mubr.msk.f32.mxu1 (!%p152_p3), %vm831_vm0, %v830_v0  ;;  %210 = vst.msk [vmem:[#allocation2] sm:$0xff] (!%p152_p3), %vm209_vm2, %v832_v3  ;;  %vm316_vm4 = vcmask (!%p152_p3), 7168   ;;  %v836_v24 = vmov (!%p152_p3), 1   ;;  %s837_s22 = smov (!%p152_p3), 80   ;;  %vm504_vm5 = vcmask (!%p152_p3), 15368   ;;  %vm212_vm6 = vcmask (!%p152_p3), 261120  }
   0x9   : > { %789 = vset.pattern.permute.xlu0 (!%p152_p3), %v833_v7  ;;  %792 = vset.pattern.permute.xlu1 (!%p152_p3), %v836_v24  ;;  %213 = vst.msk [vmem:[#allocation4] sm:$0xff] (!%p152_p3), %vm212_vm6, %v830_v0  ;;  %s838_s23 = smov (!%p152_p3), 16   ;;  %vm594_vm7 = vcmask (!%p152_p3), 261248  }
   0xe   : > { %s936_s9 = smov (!%p184_p4, %s820_s9), 1  ;;  %v294_v40 = vld [vmem:[#allocation3] sm:$0xff] }
   0xf   : > { %s878_s13 = sshll.u32 %s936_s9, 3  ;;  %v293_v8 = vld [vmem:[#allocation2] sm:$0xff] }
  0x10   : > { %s197_s16 = scalar_lea.vmem %s929_s1, %s878_s13  ;;  %s190_s19 = scalar_lea.vmem %s928_s0, %s878_s13  ;;  %v318_v44 = vld [vmem:[#allocation4] sm:$0xff] }
  0x11   : > { %v215_v1 = vld [vmem:[%s197_s16] sm:$0xff]  ;;  %s204_s26 = scalar_lea.vmem %s930_s2, %s878_s13 }
  0x12   : > { %737 = vmatpush3.xpose.msk.msra.mxu0 %vm216_vm1, %v215_v1  ;;  %v214_v2 = vld [vmem:[%s190_s19] sm:$0xff]  ;;  %325 = vrot.lane.b32.xlu1 %v215_v1, %s834_s20 }
  0x13   : > { %751 = vmatprep.subr.mxu0 %v830_v0 }
  0x15   : > { %739 = vmatmul.mubr.msk.f32.vlgmr.msra.gmra.mrb[0].mxu0 %vm216_vm1, %v214_v2 }
  0x16   : > { %753 = vmatprep.mubr.msk.f32.mxu0 %vm831_vm0, %v830_v0  ;;  %406 = vrot.lane.b32.xlu1 %v215_v1, %s835_s21 }
  0x1a   : > { %404 = vrot.lane.b32.xlu1 %v214_v2, %s835_s21 }
  0x84   : > { %v326_v12 = vpop.permute.xlu1 %325 }
  0x85   : > { %742 = vmatpush3.msra.mxu1 %v326_v12 }
  0x86   : > { %746 = vmatprep.subr.mxu1 %v830_v0 }
  0x88   : > { %v407_v16 = vpop.permute.xlu1 %406 }
  0x8c   : > { %v405_v18 = vpop.permute.xlu1 %404 }
  0xe8   : > { %v289_v4 = vpop.f32.mrb[0].mxu0 }
  0xe9   : > { %v740_v5 = vpop.f32.mrb[1].mxu0  ;;  %v296_v6 = vsel %vm295_vm3, %v289_v4, -inf }
  0xea   : > { %297 = vmax.xlane.f32.xlu0 %v296_v6 }
 0x177   : > { %v298_v9 = vpop.xlane.xlu0 %297 }
 0x178   : > { %v299_v10 = vmax.f32 %v293_v8, %v298_v9 }
 0x17a   : > { %v300_v11 = vsub.f32 %v293_v8, %v299_v10  ;;  %403 = vst.msk [vmem:[#allocation2] sm:$0xff] %vm316_vm4, %v299_v10  ;;  %305 = vperm.xlu0 %789, %v299_v10  }
 0x17c   : > { %v301_v31 = vmul.f32 1.442695, %v300_v11 }
 0x17e   : > { %790 = vset.pattern.permute.xlu0 %v836_v24 }
 0x181   : > { %v482_v26 = vld [vmem:[#allocation2] sm:$0xff] }
 0x1f9   : > { %v306_v13 = vpop.permute.xlu0 %305 }
 0x1fa   : > { %v308_v14 = vsub.f32 %v289_v4, %v306_v13 }
 0x1fc   : > { %v309_v15 = vmul.f32 1.442695, %v308_v14 }
 0x1fe   : > { %796 = vpow2.f32 %v309_v15 }
 0x1ff   : > { %798 = vpow2.f32 %v301_v31 }
 0x208   : > { %v797_v17 = vpop.eup %796 }
 0x209   : > { %744 = vmatmul.mubr.msk.f32.vlgmr.msra.gmra.mrb[0].mxu1 %vm295_vm3, %v797_v17  ;;  %v312_v30 = vsel %vm295_vm3, %v797_v17, 0.0  ;;  %v799_v32 = vpop.eup %798 }
 0x20a   : > { %747 = vmatpush3.xpose.msk.msra.mxu1 %vm216_vm1, %v407_v16  ;;  %748 = vmatprep.mubr.msk.f32.mxu1 %vm831_vm0, %v830_v0  ;;  %v311_v41 = vmul.f32 %v799_v32, %v294_v40 }
 0x20d   : > { %749 = vmatmul.mubr.msk.f32.vlgmr.msra.gmra.mrb[2].mxu1 %vm216_vm1, %v405_v18 }
 0x2dc   : > { %v397_v19 = vpop.f32.mrb[0].mxu1 }
 0x2dd   : > { %v745_v20 = vpop.f32.mrb[1].mxu1 }
 0x2e0   : > { %v478_v21 = vpop.f32.mrb[2].mxu1 }
 0x2e1   : > { %v750_v22 = vpop.f32.mrb[3].mxu1  ;;  %v484_v23 = vsel %vm295_vm3, %v478_v21, -inf }
 0x2e2   : > { %485 = vmax.xlane.f32.xlu1 %v484_v23 }
 0x2f3   : > { %513 = vrot.lane.b32.xlu1 %v215_v1, %s837_s22 }
 0x36f   : > { %v486_v25 = vpop.xlane.xlu1 %485 }
 0x370   : > { %v487_v27 = vmax.f32 %v482_v26, %v486_v25 }
 0x372   : > { %v488_v28 = vsub.f32 %v482_v26, %v487_v27  ;;  %596 = vst.msk [vmem:[#allocation2] sm:$0xff] %vm504_vm5, %v487_v27  ;;  %493 = vperm.xlu0 %790, %v487_v27  }
 0x373   : > { %v514_v29 = vpop.permute.xlu1 %513 }
 0x374   : > { %752 = vmatpush3.msra.mxu0 %v514_v29  ;;  %v489_v38 = vmul.f32 1.442695, %v488_v28 }
 0x376   : > { %791 = vset.pattern.permute.xlu0 %v833_v7 }
 0x391   : > { %313 = vadd.xlane.f32.xlu0 %v312_v30 }
 0x3a7   : > { %321 = vperm.xlu0 %791, %v799_v32  }
 0x3ab   : > { %795 = vset.pattern.permute.xlu0 %v836_v24 }
 0x3f1   : > { %v494_v33 = vpop.permute.xlu0 %493 }
 0x3f2   : > { %v496_v34 = vsub.f32 %v478_v21, %v494_v33 }
 0x3f4   : > { %v497_v35 = vmul.f32 1.442695, %v496_v34 }
 0x3f6   : > { %800 = vpow2.f32 %v497_v35 }
 0x3f7   : > { %802 = vpow2.f32 %v489_v38 }
 0x400   : > { %v801_v36 = vpop.eup %800 }
 0x401   : > { %754 = vmatmul.mubr.msk.f32.vlgmr.msra.gmra.mrb[2].mxu0 %vm295_vm3, %v801_v36  ;;  %v500_v37 = vsel %vm295_vm3, %v801_v36, 0.0  ;;  %v803_v39 = vpop.eup %802 }
 0x402   : > { %501 = vadd.xlane.f32.xlu1 %v500_v37 }
 0x413   : > { %509 = vperm.xlu1 %792, %v803_v39  }
 0x417   : > { %793 = vset.pattern.permute.xlu1 %v833_v7 }
 0x41e   : > { %v314_v42 = vpop.xlane.xlu0 %313 }
 0x41f   : > { %v315_v43 = vadd.f32 %v314_v42, %v311_v41 }
 0x421   : > { %317 = vst.msk [vmem:[#allocation3] sm:$0xff] %vm316_vm4, %v315_v43 }
 0x426   : > { %v322_v45 = vpop.permute.xlu0 %321 }
 0x427   : > { %v324_v46 = vmul.f32 %v322_v45, %v318_v44 }
 0x428   : > { %v483_v48 = vld [vmem:[#allocation3] sm:$0xff] }
 0x429   : > { %v401_v47 = vadd.f32 %v397_v19, %v324_v46  ;;  %v499_v49 = vmul.f32 %v803_v39, %v483_v48 }
 0x42b   : > { %402 = vst.msk [vmem:[#allocation4] sm:$0xff] %vm216_vm1, %v401_v47 }
 0x432   : > { %v506_v58 = vld [vmem:[#allocation4] sm:$0xff] }
 0x48f   : > { %v502_v50 = vpop.xlane.xlu1 %501 }
 0x490   : > { %v503_v51 = vadd.f32 %v502_v50, %v499_v49 }
 0x492   : > { %505 = vst.msk [vmem:[#allocation3] sm:$0xff] %vm504_vm5, %v503_v51 }
 0x493   : > { %v510_v56 = vpop.permute.xlu1 %509 }
 0x494   : > { %v512_v59 = vmul.f32 %v510_v56, %v506_v58 }
 0x499   : > { %v600_v52 = vld [vmem:[#allocation3] sm:$0xff] }
 0x49a   : > { %804 = vrcp.f32 %v600_v52 }
 0x4a4   : > { %v805_v53 = vpop.eup %804 }
 0x4a5   : > { %605 = vperm.xlu1 %793, %v805_v53  }
 0x4a9   : > { %794 = vset.pattern.permute.xlu1 %v836_v24 }
 0x4d4   : > { %v585_v54 = vpop.f32.mrb[2].mxu0 }
 0x4d5   : > { %590 = vrot.lane.b32.xlu1 %v585_v54, %s838_s23  ;;  %v755_v55 = vpop.f32.mrb[3].mxu0 }
 0x4d9   : > { %615 = vperm.xlu1 %794, %v805_v53  }
 0x524   : > { %v606_v57 = vpop.permute.xlu1 %605 }
 0x547   : > { %v591_v60 = vpop.permute.xlu1 %590 }
 0x548   : > { %v593_v61 = vadd.f32 %v591_v60, %v512_v59 }
 0x54a   : > { %595 = vst.msk [vmem:[#allocation4] sm:$0xff] %vm594_vm7, %v593_v61 }
 0x551   : > { %v602_v62 = vld [vmem:[#allocation4] sm:$0xff] }
 0x552   : > { %v608_v63 = vmul.f32 %v606_v57, %v602_v62 }
 0x554   : > { %609 = vst.msk [vmem:[%s204_s26] sm:$0xff] %vm216_vm1, %v608_v63 }
 0x558   : > { %v616_v0 = vpop.permute.xlu1 %615 }
 0x559   : > { %v618_v1 = vmul.f32 %v616_v0, %v602_v62 }
 0x55b   : > { %619 = vst.msk [vmem:[%s204_s26] sm:$0xff] %vm594_vm7, %v618_v1 }
 0x55c PF: > { %s12_s11 = sadd.s32 1, %s828_s11   ;;  %s931_s9 = smov %s824_s10 }
 0x55d   : > { %p9_p5 = scmp.ge.s32.totalorder %s12_s11, 4   ;;  %s932_s10 = smov %s934_s12 }
 0x55f   :  { %11 = sbr.rel (!%p9_p5) target bundleno = 2 (0x2), region = 69 }

// kernel: attention_forward.5
= control target key start
LH: loop header
LB: loop body
LE: loop exit
PB: predicated region body
PF: predicated region fallthrough
CT: control target
= control target key end

     0   :  { %vm19_vm0 = vcmask 261120   ;;  %v224_v6 = vmov 0.0   ;;  %s291_s0 = inlined_call_operand.vmem [shape: f32[16,32], index: 0, kind: input, shape index: {}]   ;;  %s292_s1 = inlined_call_operand.vmem [shape: f32[32,32], index: 1, kind: input, shape index: {}]   ;;  %s293_s2 = inlined_call_operand.vmem [shape: f32[1,32], index: 2, kind: input, shape index: {}]   ;;  %s294_s3 = inlined_call_operand.hbm [shape: f32[16,32], index: 3, kind: output, shape index: {}]  }
   0x1   :  { %v26_v0 = vld [vmem:[%s292_s1] sm:$0xff]  ;;  %v27_v1 = vld [vmem:[%s292_s1 + $0x8] sm:$0xff]  ;;  %v28_v2 = vld [vmem:[%s292_s1 + $0x10] sm:$0xff]  ;;  %21 = vst.msk [vmem:[#allocation2 + $0x8] sm:$0xff] %vm19_vm0, %v224_v6 }
   0x2   :  { %v184_v3 = vpack.c.bf16 %v27_v1, %v26_v0  ;;  %vm185_vm1 = vmpackc.low %vm19_vm0, %vm19_vm0  ;;  %v29_v4 = vld [vmem:[%s292_s1 + $0x18] sm:$0xff]  ;;  %v24_v5 = vld [vmem:[%s291_s0] sm:$0xff]  ;;  %20 = vst.msk [vmem:[#allocation2] sm:$0xff] %vm19_vm0, %v224_v6 }
   0x3   :  { %v190_v7 = vpack.c.bf16 %v29_v4, %v28_v2  ;;  %181 = vmatprep.mubr.msk.f32.mxu0 %vm19_vm0, %v24_v5 }
   0x4   :  { %8 = vsyncpa [#allocation4], 0  ;;  %186 = vmatprep.subr.msk.bf16.mxu0 %vm185_vm1, %v184_v3  ;;  %v25_v8 = vld [vmem:[%s291_s0 + $0x8] sm:$0xff]  ;;  %v166_v15 = vld [vmem:[%s293_s2] ss:$0 sm:$0xff]  ;;  %s225_s25 = smov [#allocation3]  }
   0x5   :  { %189 = vmatpush3.bf16.xpose.msk.msra.mxu0 %vm185_vm1, %v184_v3  ;;  %s149_s26 = sshll.u32 %s225_s25, 4  ;;  %s150_s26 = int_to_ptr.vmem [resolvable:$true] %s149_s26 }
   0x6   :  { %192 = vmatprep.subr.msk.bf16.mxu0 %vm185_vm1, %v190_v7  ;;  %s200_s0 = scalar_lea.vmem %s150_s26, 256  ;;  %p205_p1 = scmp.lt.s32.totalorder %s150_s26, %s150_s26 }
   0x7   :  { %p201_p0 = scmp.ne.s32.totalorder %s150_s26, %s200_s0  ;;  %p206_p2 = scmp.lt.s32.totalorder %s200_s0, %s200_s0 }
   0x8   :  { %v23_v9 = vld [vmem:[#allocation2 + $0x8] sm:$0xff] }
   0x9   :  { %v22_v10 = vld [vmem:[#allocation2] sm:$0xff]  ;;  %p207_p3 = por %p206_p2, %p205_p1 }
   0xb   :  { %p208_p4 = pnand %p207_p3, %p201_p0 }
   0xd   :  { %195 = vmatpush3.bf16.xpose.msk.msra.mxu0 %vm185_vm1, %v190_v7 }
  0x14   :  { %182 = vmatmul.mubr.msk.f32.vlgmr.msra.gmra.mrb[0].mxu0 %vm19_vm0, %v25_v8 }
  0xe7   :  { %v183_v11 = vpop.f32.mrb[0].mxu0 }
  0xe8   :  { %v125_v12 = vadd.f32 %v183_v11, %v23_v9  ;;  %v115_v13 = vpop.f32.mrb[1].mxu0 }
  0xe9   :  { %v124_v14 = vadd.f32 %v115_v13, %v22_v10 }
  0xea   :  { %127 = vst.msk [vmem:[#allocation2 + $0x8] sm:$0xff] %vm19_vm0, %v125_v12 }
  0xeb   :  { %126 = vst.msk [vmem:[#allocation2] sm:$0xff] %vm19_vm0, %v124_v14 }
  0xf1   :  { %v132_v16 = vld [vmem:[#allocation2 + $0x8] sm:$0xff] }
  0xf2   :  { %v131_v17 = vld [vmem:[#allocation2] sm:$0xff]  ;;  %v141_v18 = vadd.f32 %v166_v15, %v132_v16 }
  0xf3   :  { %v140_v19 = vadd.f32 %v166_v15, %v131_v17 }
  0xf4   :  { %143 = vst.msk [vmem:[#allocation3 + $0x8] sm:$0xff] %vm19_vm0, %v141_v18 }
  0xf5   :  { %142 = vst.msk [vmem:[#allocation3] sm:$0xff] %vm19_vm0, %v140_v19 }
  0xf6   :  { %211 = shalt.err (!%p208_p4)
}
  0xf7   :  { %s212_s28 = scalar_lea.hbm %s294_s3, 256 }
  0xf8   :  { %p213_p5 = scmp.ne.s32.totalorder %s294_s3, %s212_s28  ;;  %p216_p6 = scmp.lt.u32.totalorder %s212_s28, %s294_s3 }
  0xfa   :  { %p218_p7 = pnand %p216_p6, %p213_p5 }
  0xfc   :  { %221 = shalt.err (!%p218_p7)
}
  0xfd   :  { %s226_s6 = smov 128   ;;  %s227_s7 = smov 8  }
  0xfe   :  { %155 = dma.vmem_to_hbm [thread:$0]  %s150_s26, 256, %s294_s3, [#allocation4], %s226_s6, %s226_s6, %s227_s7  }
  0xff   :  { %222 = dma.done.wait [#allocation4], 256  }
 0x100   :  { %223 = vsyncadd [#allocation4], 4294967040 }
 0x101   :  { %159 = vsyncpa [#allocation4], 1 }

</bundles_post_ra>
